<compile_context>
chip_gen: v5e
topology: v5e:2x2
jax: 0.10.0
libtpu: 0.0.40
codegen_flags: <defaults>
</compile_context>

<pallas_src>
import functools
import math

import jax
import jax.numpy as jnp
from jax import lax
from jax.experimental import pallas as pl
from jax.experimental.pallas import tpu as pltpu

LABEL_SMOOTHING = 0.1


# ---------------------------------------------------------------------------
# Small helpers
# ---------------------------------------------------------------------------
def _round_up(x, m):
    return ((x + m - 1) // m) * m


def _lcm(a, b):
    return a * b // math.gcd(a, b)


def _vmem_budget_bytes():
    """VMEM budget re-derived per chip generation (v7x has only 64 MiB)."""
    cap = 64 * 1024 * 1024
    try:
        info = pltpu.get_tpu_info()
        cap = int(getattr(info, "vmem_capacity_bytes", cap))
    except Exception:
        pass
    return min((cap * 3) // 4, 96 * 1024 * 1024)


def _atten_factors(emb, logits):
    """Per-patch scalars needed by the attention kernels, in both orientations.

    channels: [sigmoid(p), exp(sigmoid), exp(-sigmoid), 1/||e||]  (all f32).
    Returns row_fac (G, Np, 4) and col_fac (G, 4, Np).  O(G*N) exps + one pass
    over the embeddings for the norms -- replaces O(N^2) in-kernel EUP work and
    per-step tile normalization.
    """
    s = jax.nn.sigmoid(logits.astype(jnp.float32))
    e = jnp.exp(s)
    ie = jnp.exp(-s)
    sq = jnp.sum(jnp.square(emb.astype(jnp.float32)), axis=-1)
    inv_n = lax.rsqrt(jnp.maximum(sq, 1e-16))        # matches torch's 1e-8 norm clamp
    row_fac = jnp.stack([s, e, ie, inv_n], axis=-1)  # (G, Np, 4)
    col_fac = jnp.stack([s, e, ie, inv_n], axis=1)   # (G, 4, Np)
    return row_fac, col_fac


# ---------------------------------------------------------------------------
# Shared in-kernel tile math
# ---------------------------------------------------------------------------
def _tile_terms(er, ec, rfac, cfac, *, eps, n_valid, col_start, masked):
    """Per (row-tile, col-tile) contributions to the three row accumulators.

    er (tm, D), ec (tk, D): raw embedding tiles (input dtype, no casts).
    rfac (tm, 4), cfac (4, tk): precomputed f32 per-patch factors.
    Returns (d_exp, d_sz, d_s), each (tm, 1) f32.
    """
    s_r, e_r, ie_r, in_r = rfac[:, 0:1], rfac[:, 1:2], rfac[:, 2:3], rfac[:, 3:4]
    s_c, e_c, ie_c, in_c = cfac[0:1, :], cfac[1:2, :], cfac[2:3, :], cfac[3:4, :]

    # Cosine targets: raw-dtype gram on the MXU (f32 accumulation), then a
    # rank-1 inverse-norm scale of the f32 result (no per-step normalization).
    gram = lax.dot_general(er, ec, (((1,), (1,)), ((), ())),
                           preferred_element_type=jnp.float32)          # (tm, tk)
    cos = (gram * in_r) * in_c

    # Shifted attention logits; the row max is exactly 1 (diagonal), so
    # z = -|s_i - s_j| and exp(z) = min(E_i*invE_j, invE_i*E_j)  (no EUP exp).
    z = -jnp.abs(s_r - s_c)
    exp_z = jnp.minimum(e_r * ie_c, ie_r * e_c)

    smoothed = cos * (1.0 - eps) + (eps / n_valid)
    sz = smoothed * z

    if masked:  # static flag: only traced when padding exists
        col = col_start + lax.broadcasted_iota(jnp.int32, (1, ec.shape[0]), 1)
        valid = col < n_valid
        exp_z = jnp.where(valid, exp_z, 0.0)
        sz = jnp.where(valid, sz, 0.0)
        smoothed = jnp.where(valid, smoothed, 0.0)

    return (jnp.sum(exp_z, axis=-1, keepdims=True),
            jnp.sum(sz, axis=-1, keepdims=True),
            jnp.sum(smoothed, axis=-1, keepdims=True))


def _row_tile_loss(acc_exp, acc_sz, acc_s, *, n_valid, row_start, masked):
    """Finalize one row tile: sum_i [ (sum_j sm)*lse_i - sum_j sm*z ]."""
    lse = jnp.log(acc_exp)                       # (tm, 1) EUP logs, negligible
    row_loss = acc_s * lse - acc_sz
    if masked:
        row = row_start + lax.broadcasted_iota(jnp.int32, row_loss.shape, 0)
        row_loss = jnp.where(row < n_valid, row_loss, 0.0)
    return jnp.sum(row_loss)


# ---------------------------------------------------------------------------
# Kernels
# ---------------------------------------------------------------------------
def _atten_resident_kernel(emb_ref, rfac_ref, cfac_ref, out_ref, *,
                           eps, n_valid, tm, tk, masked):
    """Full-bag-resident path: grid (bag, row_tile), both parallel.

    The (N_pad, D) bag block has a constant block index across row tiles, so it
    is DMA'd once per bag; column tiles are in-kernel VMEM slices.
    """
    i = pl.program_id(1)
    n_pad = emb_ref.shape[0]
    nk = n_pad // tk

    row0 = pl.multiple_of(i * tm, tm)
    er = emb_ref[pl.ds(row0, tm), :]             # row tile, sliced from resident block
    rfac = rfac_ref[...]

    def body(k, carry):
        a_exp, a_sz, a_s = carry
        col0 = k * tk
        ec = emb_ref[pl.ds(col0, tk), :]
        cfac = cfac_ref[:, pl.ds(col0, tk)]
        d_exp, d_sz, d_s = _tile_terms(er, ec, rfac, cfac, eps=eps,
                                       n_valid=n_valid, col_start=col0,
                                       masked=masked)
        return a_exp + d_exp, a_sz + d_sz, a_s + d_s

    zeros = jnp.zeros((tm, 1), jnp.float32)
    a_exp, a_sz, a_s = lax.fori_loop(0, nk, body, (zeros, zeros, zeros),
                                     unroll=(nk <= 8))

    partial = _row_tile_loss(a_exp, a_sz, a_s, n_valid=n_valid,
                             row_start=row0, masked=masked)
    out_ref[...] = jnp.full((8, 128), partial, dtype=jnp.float32)


def _atten_stream_kernel(emb_row_ref, emb_col_ref, rfac_ref, cfac_ref, out_ref,
                         acc_exp, acc_sz, acc_s, *, eps, n_valid, tm, tk, masked):
    """Streaming path: grid (bag, row_tile, col_tile) = (parallel, parallel, arbitrary).

    Per-row partials accumulate in VMEM scratch across the col-tile axis; each
    (bag, row_tile) writes its own lane-dense (8,128) output block, so both the
    bag and row-tile axes can be split across TensorCores.
    """
    i = pl.program_id(1)
    k = pl.program_id(2)
    nk = pl.num_programs(2)

    @pl.when(k == 0)
    def _init():
        acc_exp[...] = jnp.zeros_like(acc_exp)
        acc_sz[...] = jnp.zeros_like(acc_sz)
        acc_s[...] = jnp.zeros_like(acc_s)
        out_ref[...] = jnp.zeros_like(out_ref)

    d_exp, d_sz, d_s = _tile_terms(
        emb_row_ref[...], emb_col_ref[...], rfac_ref[...], cfac_ref[...],
        eps=eps, n_valid=n_valid, col_start=k * tk, masked=masked)
    acc_exp[...] += d_exp
    acc_sz[...] += d_sz
    acc_s[...] += d_s

    @pl.when(k == nk - 1)
    def _fin():
        partial = _row_tile_loss(acc_exp[...], acc_sz[...], acc_s[...],
                                 n_valid=n_valid, row_start=i * tm, masked=masked)
        out_ref[...] = jnp.full((8, 128), partial, dtype=jnp.float32)


def cls_ce_kernel(logits_ref, tgt_ref, out_ref, *, eps):
    """CrossEntropyLoss(label_smoothing=eps) with integer targets, mean reduction."""
    logits = logits_ref[...].astype(jnp.float32)                  # (B, C)
    n_rows, n_classes = logits.shape
    m = jnp.max(logits, axis=-1, keepdims=True)
    z = logits - m
    lse = jnp.log(jnp.sum(jnp.exp(z), axis=-1, keepdims=True))
    logsm = z - lse
    classes = lax.broadcasted_iota(jnp.int32, logits.shape, 1)    # (B, C)
    onehot = (classes == tgt_ref[...]).astype(jnp.float32)        # tgt: (B, 1) int32
    smoothed = onehot * (1.0 - eps) + eps / n_classes
    per_row = -jnp.sum(smoothed * logsm, axis=-1, keepdims=True)  # (B, 1)
    out_ref[...] = jnp.sum(per_row, axis=0, keepdims=True) / n_rows


# ---------------------------------------------------------------------------
# Wrappers
# ---------------------------------------------------------------------------
def _choose_tiles(N, D, itemsize, budget, resident, tile_m, tile_k):
    """Pick (tm, tk, n_pad) with tm%8==0 (or ==n_pad) and tk%128==0 (or ==n_pad)."""
    n8 = _round_up(max(N, 1), 8)
    if tile_m is not None or tile_k is not None:
        tm = int(tile_m if tile_m is not None else tile_k)
        tk = int(tile_k if tile_k is not None else tile_m)
        return tm, tk, _round_up(N, _lcm(tm, tk))
    # Whole bag as a single tile when small (no padding beyond sublane alignment).
    if n8 <= 512 and (9 * n8 * n8 * 4 + 4 * n8 * D * itemsize) <= budget // 2:
        return n8, n8, n8
    # MXU-friendly tiles (256/512), shrunk until the per-step footprint fits VMEM.
    tm, tk = 512, 512

    def step_bytes(m, k):
        tiles_f32 = 9 * m * k * 4                      # per-step (tm,tk) f32 temporaries
        if resident:
            return 2 * _round_up(N, max(m, k)) * D * itemsize + tiles_f32
        return 2 * (m + k) * D * itemsize + tiles_f32 + 64 * (m + k)

    while step_bytes(tm, tk) > (budget * 11) // 20 and (tm > 128 or tk > 128):
        if tm >= tk and tm > 128:
            tm //= 2
        else:
            tk //= 2
    return tm, tk, _round_up(N, max(tm, tk))


def attention_loss(patch_embeds, patch_logits, eps=LABEL_SMOOTHING, *,
                   tile_m=None, tile_k=None, resident=None):
    """Batched MIL attention loss.

    patch_embeds: (G, N, D); patch_logits: (G, N).  Returns the mean over bags
    of the per-bag (mean-over-rows) soft cross-entropy.
    """
    G, N, D = patch_embeds.shape
    itemsize = jnp.dtype(patch_embeds.dtype).itemsize
    budget = _vmem_budget_bytes()

    if resident is None:
        # Full-bag resident when the double-buffered bag block leaves ample
        # headroom for the f32 tile temporaries (budget derived per chip gen).
        resident = 2 * _round_up(N, 8) * D * itemsize <= budget // 3

    tm, tk, n_pad = _choose_tiles(N, D, itemsize, budget, resident, tile_m, tile_k)
    assert n_pad % tm == 0 and n_pad % tk == 0
    masked = n_pad > N

    emb, lg = patch_embeds, patch_logits
    if masked:
        emb = jnp.pad(emb, ((0, 0), (0, n_pad - N), (0, 0)))
        lg = jnp.pad(lg, ((0, 0), (0, n_pad - N)))
    rfac, cfac = _atten_factors(emb, lg)

    n_i = n_pad // tm
    n_k = n_pad // tk
    out_shape = jax.ShapeDtypeStruct((G * n_i, 8, 128), jnp.float32)
    params = dict(eps=float(eps), n_valid=N, tm=tm, tk=tk, masked=masked)

    if resident:
        out = pl.pallas_call(
            functools.partial(_atten_resident_kernel, **params),
            out_shape=out_shape,
            grid=(G, n_i),
            in_specs=[
                pl.BlockSpec((None, n_pad, D), lambda b, i: (b, 0, 0)),   # whole bag, 1 DMA/bag
                pl.BlockSpec((None, tm, 4), lambda b, i: (b, i, 0)),      # row factors
                pl.BlockSpec((None, 4, n_pad), lambda b, i: (b, 0, 0)),   # col factors
            ],
            out_specs=pl.BlockSpec((None, 8, 128),
                                   lambda b, i, _n=n_i: (b * _n + i, 0, 0)),
            compiler_params=pltpu.CompilerParams(
                dimension_semantics=("parallel", "parallel"),
                vmem_limit_bytes=budget),
        )(emb, rfac, cfac)
    else:
        out = pl.pallas_call(
            functools.partial(_atten_stream_kernel, **params),
            out_shape=out_shape,
            grid=(G, n_i, n_k),
            in_specs=[
                pl.BlockSpec((None, tm, D), lambda b, i, k: (b, i, 0)),   # row embeds
                pl.BlockSpec((None, tk, D), lambda b, i, k: (b, k, 0)),   # col embeds
                pl.BlockSpec((None, tm, 4), lambda b, i, k: (b, i, 0)),   # row factors
                pl.BlockSpec((None, 4, tk), lambda b, i, k: (b, 0, k)),   # col factors
            ],
            out_specs=pl.BlockSpec((None, 8, 128),
                                   lambda b, i, k, _n=n_i: (b * _n + i, 0, 0)),
            scratch_shapes=[pltpu.VMEM((tm, 1), jnp.float32)] * 3,
            compiler_params=pltpu.CompilerParams(
                dimension_semantics=("parallel", "parallel", "arbitrary"),
                vmem_limit_bytes=budget),
        )(emb, emb, rfac, cfac)

    return jnp.sum(out[:, 0, 0]) / (G * N)


def cls_cross_entropy(cls_logits, cls_targets, eps=LABEL_SMOOTHING):
    B, C = cls_logits.shape
    tgt = cls_targets.reshape(B, 1).astype(jnp.int32)
    out = pl.pallas_call(
        functools.partial(cls_ce_kernel, eps=eps),
        out_shape=jax.ShapeDtypeStruct((1, 1), jnp.float32),
        grid=(1,),
        in_specs=[pl.BlockSpec((B, C), lambda i: (0, 0)),
                  pl.BlockSpec((B, 1), lambda i: (0, 0))],
        out_specs=pl.BlockSpec((1, 1), lambda i: (0, 0)),
    )(cls_logits, tgt)
    return out[0, 0]


class MILLoss:
    """JAX/Pallas port of slimai MILLoss forward."""

    def __init__(self, atten_loss=False, label_smoothing=LABEL_SMOOTHING):
        self.atten_loss = atten_loss
        self.label_smoothing = label_smoothing

    def __call__(self, backbone, atten_logits, cls_logits, cls_targets):
        loss = {}
        if self.atten_loss:
            shapes = {tuple(e.shape) for e in backbone}
            if len(shapes) == 1:
                # Batch all bags into one pallas_call (one dispatch, pipelined).
                emb = jnp.stack(backbone, axis=0)                        # (G, N, D)
                lg = jnp.stack([jnp.reshape(a, (-1,)) for a in atten_logits], axis=0)
                loss["atten_loss"] = attention_loss(emb, lg, self.label_smoothing)
            else:
                # Ragged bag sizes: per-bag calls (rare path).
                acc = 0.0
                for e, a in zip(backbone, atten_logits):
                    acc = acc + attention_loss(e[None], jnp.reshape(a, (1, -1)),
                                               self.label_smoothing)
                loss["atten_loss"] = acc / len(backbone)
        loss["cls_loss"] = cls_cross_entropy(cls_logits, cls_targets,
                                             self.label_smoothing)
        return loss


# ---------------------------------------------------------------------------
# Pure-JAX reference (for correctness checks)
# ---------------------------------------------------------------------------
def _ref_soft_ce(logits, targets, eps):
    c = logits.shape[-1]
    logsm = jax.nn.log_softmax(logits, axis=-1)
    sm = targets * (1.0 - eps) + eps / c
    return jnp.mean(-jnp.sum(sm * logsm, axis=-1))


def _ref_atten_single(e, p, eps):
    nrm = jnp.linalg.norm(e, axis=-1, keepdims=True)
    en = e / jnp.maximum(nrm, 1e-8)
    cos = en @ en.T
    s = jax.nn.sigmoid(p)
    att = 1.0 - jnp.abs(s[:, None] - s[None, :])
    return _ref_soft_ce(att, cos, eps)


def _ref_forward(backbone, atten_logits, cls_logits, cls_targets, eps=LABEL_SMOOTHING):
    acc = 0.0
    for e, p in zip(backbone, atten_logits):
        acc = acc + _ref_atten_single(e, p, eps)
    onehot = jax.nn.one_hot(cls_targets, cls_logits.shape[-1], dtype=jnp.float32)
    return {"atten_loss": acc / len(backbone),
            "cls_loss": _ref_soft_ce(cls_logits, onehot, eps)}


# ---------------------------------------------------------------------------
if __name__ == "__main__":
    key = jax.random.PRNGKey(0)
    ks = jax.random.split(key, 10)

    # Small shapes consistent with the module: 2 bags of 8 patches x 32-dim
    # embeddings; 8 bag-level logits over 16 classes.
    N, D = 8, 32
    B, C = 8, 16
    backbone = [jax.random.normal(ks[0], (N, D), jnp.float32),
                jax.random.normal(ks[1], (N, D), jnp.float32)]
    atten_logits = [jax.random.normal(ks[2], (N,), jnp.float32),
                    jax.random.normal(ks[3], (N,), jnp.float32)]
    cls_logits = jax.random.normal(ks[4], (B, C), jnp.float32)
    cls_targets = jax.random.randint(ks[5], (B,), 0, C, dtype=jnp.int32)

    loss_fn = MILLoss(atten_loss=True)
    out = loss_fn(backbone, atten_logits, cls_logits, cls_targets)
    out = {k: jax.block_until_ready(v) for k, v in out.items()}
    ref = _ref_forward(backbone, atten_logits, cls_logits, cls_targets)
    assert jnp.allclose(out["cls_loss"], ref["cls_loss"], rtol=1e-4, atol=1e-4), (
        f"cls_loss: kernel={out['cls_loss']} ref={ref['cls_loss']}")
    assert jnp.allclose(out["atten_loss"], ref["atten_loss"], rtol=1e-3, atol=1e-3), (
        f"atten_loss: kernel={out['atten_loss']} ref={ref['atten_loss']}")

    # Multi-tile checks: resident in-kernel column loop and streamed 3-D grid.
    N2, D2 = 256, 64
    emb2 = jax.random.normal(ks[6], (2, N2, D2), jnp.float32)
    lg2 = jax.random.normal(ks[7], (2, N2), jnp.float32)
    ref2 = sum(_ref_atten_single(emb2[g], lg2[g], LABEL_SMOOTHING)
               for g in range(2)) / 2.0
    v_res = jax.block_until_ready(
        attention_loss(emb2, lg2, tile_m=64, tile_k=128, resident=True))
    assert jnp.allclose(v_res, ref2, rtol=1e-3, atol=1e-3), (v_res, ref2)
    v_str = jax.block_until_ready(
        attention_loss(emb2, lg2, tile_m=64, tile_k=128, resident=False))
    assert jnp.allclose(v_str, ref2, rtol=1e-3, atol=1e-3), (v_str, ref2)

    # Non-divisible bag size -> padded + masked path, both kernels.
    N3, D3 = 200, 48
    emb3 = jax.random.normal(ks[8], (2, N3, D3), jnp.float32)
    lg3 = jax.random.normal(ks[9], (2, N3), jnp.float32)
    ref3 = sum(_ref_atten_single(emb3[g], lg3[g], LABEL_SMOOTHING)
               for g in range(2)) / 2.0
    p_res = jax.block_until_ready(
        attention_loss(emb3, lg3, tile_m=64, tile_k=128, resident=True))
    assert jnp.allclose(p_res, ref3, rtol=1e-3, atol=1e-3), (p_res, ref3)
    p_str = jax.block_until_ready(
        attention_loss(emb3, lg3, tile_m=64, tile_k=128, resident=False))
    assert jnp.allclose(p_str, ref3, rtol=1e-3, atol=1e-3), (p_str, ref3)

    print("KERNEL_OK")
</pallas_src>

<mosaic_0001>
module attributes {stable_mosaic.version = 11 : i64} {
  func.func @_atten_resident_kernel(%arg0: i32, %arg1: i32, %arg2: memref<1x8x32xf32, #tpu.memory_space<vmem>>, %arg3: memref<1x8x4xf32, #tpu.memory_space<vmem>>, %arg4: memref<1x4x8xf32, #tpu.memory_space<vmem>>, %arg5: memref<1x8x128xf32, #tpu.memory_space<vmem>>) attributes {dimension_semantics = [#tpu.dimension_semantics<parallel>, #tpu.dimension_semantics<parallel>], iteration_bounds = array<i64: 2, 1>, scalar_prefetch = 0 : i64, scratch_operands = 0 : i64, tpu.core_type = #tpu.core_type<tc>, window_params = [{transform_indices = @transform_0, window_bounds = array<i64: 1, 8, 32>}, {transform_indices = @transform_1, window_bounds = array<i64: 1, 8, 4>}, {transform_indices = @transform_2, window_bounds = array<i64: 1, 4, 8>}, {transform_indices = @transform_3, window_bounds = array<i64: 1, 8, 128>}]} {
    %c8_i32 = arith.constant 8 : i32
    %0 = arith.muli %arg1, %c8_i32 : i32
    %1 = tpu.assume_multiple %0, 8 : i32
    %c0 = arith.constant 0 : index
    %2 = arith.index_cast %1 : i32 to index
    %c0_0 = arith.constant 0 : index
    %3 = vector.load %arg2[%c0, %2, %c0_0] : memref<1x8x32xf32, #tpu.memory_space<vmem>>, vector<1x8x32xf32>
    %4 = vector.shape_cast %3 : vector<1x8x32xf32> to vector<8x32xf32>
    %c0_1 = arith.constant 0 : index
    %c0_2 = arith.constant 0 : index
    %c0_3 = arith.constant 0 : index
    %5 = vector.load %arg3[%c0_1, %c0_2, %c0_3] : memref<1x8x4xf32, #tpu.memory_space<vmem>>, vector<1x8x4xf32>
    %6 = vector.shape_cast %5 : vector<1x8x4xf32> to vector<8x4xf32>
    %cst = arith.constant 0.000000e+00 : f32
    %7 = vector.broadcast %cst : f32 to vector<8x1xf32>
    %c0_i32 = arith.constant 0 : i32
    %c8_i32_4 = arith.constant 8 : i32
    %8 = arith.muli %c0_i32, %c8_i32_4 : i32
    %c0_5 = arith.constant 0 : index
    %9 = arith.index_cast %8 : i32 to index
    %c0_6 = arith.constant 0 : index
    %10 = vector.load %arg2[%c0_5, %9, %c0_6] : memref<1x8x32xf32, #tpu.memory_space<vmem>>, vector<1x8x32xf32>
    %11 = vector.shape_cast %10 : vector<1x8x32xf32> to vector<8x32xf32>
    %c0_7 = arith.constant 0 : index
    %c0_8 = arith.constant 0 : index
    %12 = arith.index_cast %8 : i32 to index
    %13 = vector.load %arg4[%c0_7, %c0_8, %12] : memref<1x4x8xf32, #tpu.memory_space<vmem>>, vector<1x4x8xf32>
    %14 = vector.shape_cast %13 : vector<1x4x8xf32> to vector<4x8xf32>
    %15 = vector.extract_strided_slice %6 {offsets = [0, 0], sizes = [8, 1], strides = [1, 1]} : vector<8x4xf32> to vector<8x1xf32>
    %16 = vector.extract_strided_slice %6 {offsets = [0, 1], sizes = [8, 1], strides = [1, 1]} : vector<8x4xf32> to vector<8x1xf32>
    %17 = vector.extract_strided_slice %6 {offsets = [0, 2], sizes = [8, 1], strides = [1, 1]} : vector<8x4xf32> to vector<8x1xf32>
    %18 = vector.extract_strided_slice %6 {offsets = [0, 3], sizes = [8, 1], strides = [1, 1]} : vector<8x4xf32> to vector<8x1xf32>
    %19 = vector.extract_strided_slice %14 {offsets = [0, 0], sizes = [1, 8], strides = [1, 1]} : vector<4x8xf32> to vector<1x8xf32>
    %20 = vector.extract_strided_slice %14 {offsets = [1, 0], sizes = [1, 8], strides = [1, 1]} : vector<4x8xf32> to vector<1x8xf32>
    %21 = vector.extract_strided_slice %14 {offsets = [2, 0], sizes = [1, 8], strides = [1, 1]} : vector<4x8xf32> to vector<1x8xf32>
    %22 = vector.extract_strided_slice %14 {offsets = [3, 0], sizes = [1, 8], strides = [1, 1]} : vector<4x8xf32> to vector<1x8xf32>
    %cst_9 = arith.constant dense<0.000000e+00> : vector<8x8xf32>
    %23 = tpu.matmul %4, %11, %cst_9 {dimension_numbers = #tpu.dot_dimension_numbers<[1], [1], [0], [0], [0, 0, 1, 0], [], []>} : vector<8x32xf32>, vector<8x32xf32>, vector<8x8xf32> -> vector<8x8xf32>
    %24 = vector.broadcast %18 : vector<8x1xf32> to vector<8x8xf32>
    %25 = arith.mulf %23, %24 : vector<8x8xf32>
    %26 = vector.broadcast %22 : vector<1x8xf32> to vector<8x8xf32>
    %27 = arith.mulf %25, %26 : vector<8x8xf32>
    %28 = vector.broadcast %15 : vector<8x1xf32> to vector<8x8xf32>
    %29 = vector.broadcast %19 : vector<1x8xf32> to vector<8x8xf32>
    %30 = arith.subf %28, %29 : vector<8x8xf32>
    %31 = math.absf %30 : vector<8x8xf32>
    %cst_10 = arith.constant 0.000000e+00 : f32
    %32 = vector.broadcast %cst_10 : f32 to vector<8x8xf32>
    %33 = arith.subf %32, %31 : vector<8x8xf32>
    %34 = vector.broadcast %16 : vector<8x1xf32> to vector<8x8xf32>
    %35 = vector.broadcast %21 : vector<1x8xf32> to vector<8x8xf32>
    %36 = arith.mulf %34, %35 : vector<8x8xf32>
    %37 = vector.broadcast %17 : vector<8x1xf32> to vector<8x8xf32>
    %38 = vector.broadcast %20 : vector<1x8xf32> to vector<8x8xf32>
    %39 = arith.mulf %37, %38 : vector<8x8xf32>
    %40 = arith.minimumf %36, %39 : vector<8x8xf32>
    %cst_11 = arith.constant 0.899999976 : f32
    %41 = vector.broadcast %cst_11 : f32 to vector<8x8xf32>
    %42 = arith.mulf %27, %41 : vector<8x8xf32>
    %cst_12 = arith.constant 1.250000e-02 : f32
    %43 = vector.broadcast %cst_12 : f32 to vector<8x8xf32>
    %44 = arith.addf %42, %43 : vector<8x8xf32>
    %45 = arith.mulf %44, %33 : vector<8x8xf32>
    %cst_13 = arith.constant dense<0.000000e+00> : vector<8xf32>
    %46 = vector.multi_reduction <add>, %40, %cst_13 [1] : vector<8x8xf32> to vector<8xf32>
    %47 = vector.shape_cast %46 : vector<8xf32> to vector<8x1xf32>
    %cst_14 = arith.constant dense<0.000000e+00> : vector<8xf32>
    %48 = vector.multi_reduction <add>, %45, %cst_14 [1] : vector<8x8xf32> to vector<8xf32>
    %49 = vector.shape_cast %48 : vector<8xf32> to vector<8x1xf32>
    %cst_15 = arith.constant dense<0.000000e+00> : vector<8xf32>
    %50 = vector.multi_reduction <add>, %44, %cst_15 [1] : vector<8x8xf32> to vector<8xf32>
    %51 = vector.shape_cast %50 : vector<8xf32> to vector<8x1xf32>
    %52 = arith.addf %7, %47 : vector<8x1xf32>
    %53 = arith.addf %7, %49 : vector<8x1xf32>
    %54 = arith.addf %7, %51 : vector<8x1xf32>
    %c1_i32 = arith.constant 1 : i32
    %55 = math.log %52 : vector<8x1xf32>
    %56 = arith.mulf %54, %55 : vector<8x1xf32>
    %57 = arith.subf %56, %53 : vector<8x1xf32>
    %58 = vector.shape_cast %57 : vector<8x1xf32> to vector<1x8x1xf32>
    %cst_16 = arith.constant dense<0.000000e+00> : vector<1xf32>
    %59 = vector.multi_reduction <add>, %58, %cst_16 [1, 2] : vector<1x8x1xf32> to vector<1xf32>
    %60 = vector.shape_cast %59 : vector<1xf32> to vector<1x1x1xf32>
    %61 = vector.extract %60[0, 0, 0] : f32 from vector<1x1x1xf32>
    %62 = vector.broadcast %61 : f32 to vector<8x128xf32>
    %c0_17 = arith.constant 0 : index
    %c0_18 = arith.constant 0 : index
    %c0_19 = arith.constant 0 : index
    %63 = vector.load %arg5[%c0_17, %c0_18, %c0_19] : memref<1x8x128xf32, #tpu.memory_space<vmem>>, vector<1x8x128xf32>
    %64 = vector.shape_cast %63 : vector<1x8x128xf32> to vector<8x128xf32>
    %65 = vector.shape_cast %62 : vector<8x128xf32> to vector<1x8x128xf32>
    tpu.vector_store %arg5[%c0_17, %c0_18, %c0_19], %65 {strides = array<i32>} : memref<1x8x128xf32, #tpu.memory_space<vmem>>, vector<1x8x128xf32>,
    return
  }
  func.func @transform_0(%arg0: i32, %arg1: i32) -> (i32, i32, i32) {
    %c0_i32 = arith.constant 0 : i32
    %c0_i32_0 = arith.constant 0 : i32
    %c0_i32_1 = arith.constant 0 : i32
    return %arg0, %c0_i32, %c0_i32_0 : i32, i32, i32
  }
  func.func @transform_1(%arg0: i32, %arg1: i32) -> (i32, i32, i32) {
    %c0_i32 = arith.constant 0 : i32
    %c0_i32_0 = arith.constant 0 : i32
    return %arg0, %arg1, %c0_i32 : i32, i32, i32
  }
  func.func @transform_2(%arg0: i32, %arg1: i32) -> (i32, i32, i32) {
    %c0_i32 = arith.constant 0 : i32
    %c0_i32_0 = arith.constant 0 : i32
    %c0_i32_1 = arith.constant 0 : i32
    return %arg0, %c0_i32, %c0_i32_0 : i32, i32, i32
  }
  func.func @transform_3(%arg0: i32, %arg1: i32) -> (i32, i32, i32) {
    %c1_i32 = arith.constant 1 : i32
    %0 = arith.muli %arg0, %c1_i32 : i32
    %1 = arith.addi %0, %arg1 : i32
    %c0_i32 = arith.constant 0 : i32
    %c0_i32_0 = arith.constant 0 : i32
    %c0_i32_1 = arith.constant 0 : i32
    return %1, %c0_i32, %c0_i32_0 : i32, i32, i32
  }
}

</mosaic_0001>

<bundles_post_ra>
// kernel: tpu_custom_call.1
= control target key start
LH: loop header
LB: loop body
LE: loop exit
PB: predicated region body
PF: predicated region fallthrough
CT: control target
= control target key end

     0   :  { %8 = vsyncpa [#allocation3], 0  ;;  %s727_s0 = inlined_call_operand.vmem [shape: f32[2,8,32], index: 0, kind: input, shape index: {}]   ;;  %s728_s1 = inlined_call_operand.vmem [shape: f32[2,8,4], index: 1, kind: input, shape index: {}]   ;;  %s729_s2 = inlined_call_operand.vmem [shape: f32[2,4,8], index: 2, kind: input, shape index: {}]   ;;  %s730_s3 = inlined_call_operand.hbm [shape: f32[2,8,128], index: 3, kind: output, shape index: {}]  }
   0x1   :  { %10 = vsyncpa [#allocation3 + $0x1], 0  ;;  %s621_s12 = smov 0   ;;  %s623_s13 = smov 0  }
   0x2   :  { %s625_s14 = smov 0   ;;  %s627_s15 = smov 0  }
   0x3   :  { %s629_s16 = smov 0   ;;  %s631_s17 = smov 0  }
   0x4 LB: > { %s435_s18 = sadd.s32 4294967295, %s595_s17   ;;  %s436_s19 = sadd.s32 4294967294, %s595_s17   ;;  %s595_s17 = sphi %s631_s17, %s16_s17   ;;  %s591_s16 = sphi %s629_s16, %s737_s16   ;;  %s587_s15 = sphi %s627_s15, %s736_s15   ;;  %s583_s14 = sphi %s625_s14, %s735_s14   ;;  %s579_s13 = sphi %s623_s13, %s734_s13   ;;  %s575_s12 = sphi %s621_s12, %s733_s12  }
   0x5   : > { %s28_s20 = sadd.s32 1, %s591_s16  ;;  %s117_s21 = sadd.s32 1, %s583_s14 }
   0x6   : > { %p30_p0 = scmp.ge.s32.totalorder %s28_s20, 2  ;;  %p127_p1 = scmp.ne.s32.totalorder %s583_s14, %s579_s13 }
   0x7   : > { %p128_p2 = scmp.eq.s32.totalorder %s435_s18, 1  ;;  %p133_p3 = scmp.ne.s32.totalorder %s579_s13, %s575_s12 }
   0x8   : > { %s739_s20 = smov (%p30_p0, %s28_s20), 0  ;;  %p134_p5 = scmp.eq.s32.totalorder %s436_s19, 1 }
   0x9   : > { %p661_p4 = por %p128_p2, %p127_p1  ;;  %s114_s23 = ssub.s32 %s591_s16, %s739_s20 }
   0xa   : > { %p439_p6 = scmp.ge.s32.totalorder %s595_s17, 1  ;;  %p115_p7 = scmp.eq.s32.totalorder %s114_s23, 0 }
   0xb   : > { %p668_p8 = por %p134_p5, %p133_p3  ;;  %p176_p9 = scmp.lt.s32.totalorder %s595_s17, 3 }
   0xc   : > { %s674_s25 = scalar_select %p115_p7, %s583_s14, %s117_s21  }
   0xd   : > { %p177_p10 = pnand %p439_p6, %p176_p9 }
   0xe   : > { %p210_p11 = scmp.lt.s32.totalorder (!%p177_p10), %s587_s15, 1  ;;  %s207_s11 = sand.u32 (!%p177_p10), 1, %s579_s13  }
   0xf   : > { %180 = sbr.rel (%p177_p10) target bundleno = 467 (0x1d3), region = 32  ;;  %s440_s18 = sshll.u32 (!%p177_p10), %s207_s11, 3 }
  0x10   : > { %s447_s19 = sshll.u32 (!%p177_p10), %s587_s15, 3  ;;  %s322_s4 = scalar_lea.sflag (!%p177_p10), [#allocation3], %s207_s11 }
  0x11   : > { %s537_s8 = scalar_lea.hbm (!%p177_p10), %s730_s3, 16 }
  0x14   : > { %v597_v0 = vmov 1   ;;  %v598_v1 = vmov 3   ;;  %s211_s26 = scalar_select %p210_p11, %s587_s15, 1  ;;  %vm232_vm0 = vcmask 261120   ;;  %v599_v4 = vmov 2  }
  0x15   : > { %511 = vset.pattern.permute.xlu0 %v597_v0  ;;  %513 = vset.pattern.permute.xlu1 %v598_v1  ;;  %v600_v5 = vmov 0   ;;  %vm291_vm1 = vcmask 64512   ;;  %vm308_vm2 = vcmask 7168  }
  0x16   : > { %s441_s27 = sshll.u32 %s211_s26, 3  ;;  %s443_s7 = sshll.u32 %s211_s26, 2 }
  0x17   : > { %s220_s30 = scalar_lea.vmem %s728_s1, %s441_s27  ;;  %s213_s6 = scalar_lea.vmem %s727_s0, %s441_s27 }
  0x18   : > { %v229_v2 = vld [vmem:[%s220_s30] sm:$0xff]  ;;  %s224_s10 = scalar_lea.vmem %s729_s2, %s443_s7  ;;  %s333_s26 = scalar_lea.hbm %s730_s3, %s447_s19 }
  0x19   : > { %v230_v3 = vld [vmem:[%s213_s6] sm:$0xff]  ;;  %276 = vperm.xlu0 %511, %v229_v2   ;;  %261 = vperm.xlu1 %513, %v229_v2   ;;  %s209_s27 = scalar_lea.vmem [#allocation2], %s440_s18  ;;  %s337_s29 = sshll.u32 %s333_s26, 4  ;;  %s338_s29 = int_to_ptr.hbm [resolvable:$true] %s337_s29 }
  0x1a   : > { %444 = vmatpush.xpose.msk.msra.mxu0 %vm232_vm0, %v230_v3  ;;  %v231_v8 = vld [vmem:[%s224_s10] sm:$0xf]  ;;  %s335_s28 = sshll.u32 %s209_s27, 4  ;;  %s531_s5 = sshra.s32 %s338_s29, 4  ;;  %s336_s28 = int_to_ptr.vmem [resolvable:$true] %s335_s28  ;;  %s532_s5 = int_to_ptr.hbm [resolvable:$true] %s531_s5 }
  0x1b   : > { %v279_v9 = vperm.slane %v231_v8, 2  ;;  %v285_v10 = vperm.slane %v231_v8, 1  ;;  %v271_v11 = vperm.slane %v231_v8, 0  ;;  %v265_v18 = vperm.slane %v231_v8, 3  ;;  %s533_s6 = scalar_lea.hbm %s532_s5, 8  ;;  %p538_p1 = scmp.lt.s32.totalorder %s532_s5, %s730_s3 }
  0x1c   : > { %p534_p12 = scmp.ne.s32.totalorder %s532_s5, %s533_s6  ;;  %p539_p2 = scmp.lt.s32.totalorder %s537_s8, %s533_s6 }
  0x1d   : > { %445 = vmatmul.msk.f32.vlgmr.msra.gmra.mxu0 %vm232_vm0, %v230_v3 }
  0x1e   : > { %p535_p13 = pnand %p534_p12, %p661_p4  ;;  %p540_p3 = por %p539_p2, %p538_p1 }
  0x20   : > { %p536_p0 = pneg %p535_p13 }
  0x21   : > { %512 = vset.pattern.permute.xlu0 %v599_v4  ;;  %514 = vset.pattern.permute.xlu1 %v600_v5 }
  0x22   : > { %282 = vperm.xlu0 %512, %v229_v2   ;;  %268 = vperm.xlu1 %514, %v229_v2   ;;  %p541_p5 = pnand %p540_p3, %p536_p0 }
  0x8b   : > { %v277_v6 = vpop.permute.xlu0 %276  ;;  %v262_v7 = vpop.permute.xlu1 %261 }
  0x8c   : > { %v280_v13 = vmul.f32 %v279_v9, %v277_v6 }
  0x94   : > { %v283_v12 = vpop.permute.xlu0 %282  ;;  %v269_v15 = vpop.permute.xlu1 %268 }
  0x95   : > { %v286_v14 = vmul.f32 %v285_v10, %v283_v12  ;;  %v272_v16 = vsub.f32 %v269_v15, %v271_v11 }
  0x97   : > { %v287_v17 = vmin.f32 %v280_v13, %v286_v14  ;;  %v273_v22 = vand.u32 2147483647, %v272_v16 }
  0x99   : > { %v292_v20 = vsel %vm291_vm1, %v287_v17, 0.0  ;;  %v274_v24 = vsub.f32 0.0, %v273_v22 }
  0x9a   : > { %v256_v19 = vpop.f32.mrf.mxu0  ;;  %293 = vadd.xlane.f32.xlu2 %v292_v20 }
  0x9b   : > { %v264_v21 = vmul.f32 %v262_v7, %v256_v19 }
  0x9d   : > { %v266_v23 = vmul.f32 %v265_v18, %v264_v21 }
  0x9f   : > { %v288_v25 = vmul.f32 0.9, %v266_v23 }
  0xa1   : > { %v289_v26 = vadd.f32 0.0125, %v288_v25 }
  0xa3   : > { %v298_v27 = vsel %vm291_vm1, %v289_v26, 0.0  ;;  %v290_v28 = vmul.f32 %v289_v26, %v274_v24 }
  0xa4   : > { %299 = vadd.xlane.f32.xlu2 %v298_v27 }
  0xa5   : > { %v295_v29 = vsel %vm291_vm1, %v290_v28, 0.0 }
  0xa6   : > { %296 = vadd.xlane.f32.xlu1 %v295_v29 }
 0x10d   : > { %v294_v30 = vpop.xlane.xlu2 %293 }
 0x10e   : > { %515 = vlog2.f32 %v294_v30 }
 0x114   : > { %v516_v31 = vpop.eup %515 }
 0x115   : > { %v305_v32 = vmul.f32 0.6931472, %v516_v31 }
 0x117   : > { %v300_v33 = vpop.xlane.xlu2 %299 }
 0x118   : > { %v306_v34 = vmul.f32 %v305_v32, %v300_v33 }
 0x119   : > { %v297_v35 = vpop.xlane.xlu1 %296 }
 0x11a   : > { %v307_v36 = vsub.f32 %v306_v34, %v297_v35 }
 0x11c   : > { %v309_v37 = vsel %vm308_vm2, %v307_v36, 0.0 }
 0x11d   : > { %310 = vadd.xlane.f32.xlu2 %v309_v37 }
 0x190   : > { %v311_v38 = vpop.xlane.xlu2 %310 }
 0x191   : > { %v312_v39 = vrot.slane %v311_v38, 4 }
 0x193   : > { %v313_v40 = vadd.f32 %v312_v39, %v311_v38 }
 0x195   : > { %v314_v41 = vrot.slane %v313_v40, 2 }
 0x197   : > { %v315_v42 = vadd.f32 %v314_v41, %v313_v40 }
 0x199   : > { %v316_v43 = vrot.slane %v315_v42, 1 }
 0x19b   : > { %v317_v44 = vadd.f32 %v316_v43, %v315_v42 }
 0x19d   : > { %450 = vpush %v317_v44 }
 0x1ce   : > { %s451_s30 = spop %450 }
 0x1cf   : > { %v319_v45 = vstv %s451_s30 }
 0x1d0   : > { %320 = vst [vmem:[%s209_s27] sm:$0xff] %v319_v45 }
 0x1d1   : > { %544 = shalt.err (!%p541_p5)
}
 0x1d2   : > { %452 = dma.vmem_to_hbm [thread:$0]  (%p661_p4), %s336_s28, 128, %s338_s29, %s322_s4  }
 0x1d3 PF: > { %p458_p6 = scmp.ge.s32.totalorder %s595_s17, 2  ;;  %s349_s11 = sand.u32 1, %s575_s12  }
 0x1d4   : > { %s350_s18 = scalar_lea.sflag [#allocation3], %s349_s11 }
 0x1d5   : > { %p455_p7 = pnand %p458_p6, %p668_p8 }
 0x1d7   : > { %p456_p9 = pneg %p455_p7 }
 0x1d9   : > { %570 = dma.done.wait (%p456_p9), %s350_s18, 128  }
 0x1da   : > { %572 = vsyncadd (%p456_p9), %s350_s18, 4294967168  ;;  %s16_s17 = sadd.s32 1, %s595_s17   ;;  %s733_s12 = smov %s579_s13 }
 0x1db   : > { %p13_p10 = scmp.ge.s32.totalorder %s16_s17, 4   ;;  %s734_s13 = smov %s583_s14 }
 0x1dc   : > { %s735_s14 = smov %s674_s25  ;;  %s736_s15 = smov %s591_s16 }
 0x1dd   : > { %s737_s16 = smov %s739_s20  ;;  %15 = sbr.rel (!%p13_p10) target bundleno = 4 (0x4), region = 74 }
 0x1e2   :  { %356 = vsyncpa [#allocation3], 1 }
 0x1e3   :  { %358 = vsyncpa [#allocation3 + $0x1], 1 }

</bundles_post_ra>
